<compile_context>
chip_gen: v7x
topology: tpu7x:2x2x1
jax: 0.10.0
libtpu: 0.0.40
codegen_flags: <defaults>
</compile_context>

<pallas_src>
import functools

import jax
import jax.numpy as jnp
from jax.experimental import pallas as pl
from jax.experimental.pallas import tpu as pltpu


def regression_net_kernel(x_ref, w1_ref, b1_ref, w2_ref, b2_ref, o_ref):
    x = x_ref[...]            # (1, TN)  batch on the lane axis
    w1 = w1_ref[...]          # (H, 1)   torch fc1.weight
    b1 = b1_ref[...]          # (H, 1)   torch fc1.bias (as a column)
    w2 = w2_ref[...]          # (H, 1)   torch fc2.weight (as a column)
    b2 = b2_ref[0]            # scalar bias from SMEM

    # fc1: (N,1)@(1,H) is a rank-1 outer product -> VPU broadcast multiply-add (no MXU).
    z = w1 * x + b1                                    # (H, TN)

    # Numerically-stable sigmoid; exp and reciprocal both go to the EUP slot.
    e = jnp.exp(-jnp.abs(z))                           # (H, TN)
    inv = pl.reciprocal(1.0 + e, approx=True)
    h = jnp.where(z >= 0, inv, e * inv)                # sigmoid(z)

    # fc2: multiply by the weight column (VPU) + cross-sublane reduce over H (XLU).
    y = jnp.sum(h * w2, axis=0, keepdims=True) + b2    # (1, TN)
    o_ref[...] = y.astype(o_ref.dtype)


def _round_up(a, b):
    return (a + b - 1) // b * b


@functools.partial(jax.jit, static_argnames=("block_n",))
def regression_net_forward(x, fc1_w, fc1_b, fc2_w, fc2_b, *, block_n=512):
    """Forward pass of RegressionNet.

    x:     (N, 1) float32   (PyTorch nn.Linear convention)
    fc1_w: (H, 1) = torch fc1.weight     fc1_b: (H,) = torch fc1.bias
    fc2_w: (1, H) = torch fc2.weight     fc2_b: (1,) = torch fc2.bias
    returns (N, 1) float32
    """
    N = x.shape[0]
    H = fc1_w.shape[0]

    # Lane-dense layout: batch on the last axis, padded to a lane-aligned tile of <= block_n.
    tn = min(block_n, _round_up(N, 128))
    n_pad = _round_up(N, tn)
    x_lane = jnp.pad(x.reshape(1, N).astype(jnp.float32), ((0, 0), (0, n_pad - N)))

    w1 = fc1_w.reshape(H, 1).astype(jnp.float32)
    b1 = fc1_b.reshape(H, 1).astype(jnp.float32)
    w2 = fc2_w.reshape(H, 1).astype(jnp.float32)
    b2 = fc2_b.reshape(1).astype(jnp.float32)

    grid = (n_pad // tn,)

    cost = pl.CostEstimate(
        flops=int(n_pad * (4 * H + 2)),
        transcendentals=int(n_pad * H),
        bytes_accessed=int(4 * (2 * n_pad + 3 * H + 1)),
    )

    out = pl.pallas_call(
        regression_net_kernel,
        out_shape=jax.ShapeDtypeStruct((1, n_pad), jnp.float32),
        grid=grid,
        in_specs=[
            pl.BlockSpec((1, tn), lambda i: (0, i)),            # x tile (lane-dense)
            pl.BlockSpec((H, 1), lambda i: (0, 0)),             # fc1 weight column
            pl.BlockSpec((H, 1), lambda i: (0, 0)),             # fc1 bias column
            pl.BlockSpec((H, 1), lambda i: (0, 0)),             # fc2 weight column
            pl.BlockSpec(memory_space=pltpu.MemorySpace.SMEM),  # fc2 bias scalar in SMEM
        ],
        out_specs=pl.BlockSpec((1, tn), lambda i: (0, i)),
        compiler_params=pltpu.CompilerParams(
            dimension_semantics=("parallel",),                  # shard batch axis on v7x's 2 TCs
        ),
        cost_estimate=cost,
    )(x_lane, w1, b1, w2, b2)

    # Strip the lane padding and return the PyTorch-shaped (N, 1) result.
    return out[:, :N].reshape(N, 1)


def init_params(key, n_hidden_neurons):
    """Deterministic init mirroring torch.nn.Linear defaults (uniform(+-1/sqrt(fan_in)))."""
    k1, k2, k3, k4 = jax.random.split(key, 4)
    bound1 = 1.0  # fan_in = 1
    fc1_w = jax.random.uniform(k1, (n_hidden_neurons, 1), jnp.float32, -bound1, bound1)
    fc1_b = jax.random.uniform(k2, (n_hidden_neurons,), jnp.float32, -bound1, bound1)
    bound2 = 1.0 / (n_hidden_neurons ** 0.5)
    fc2_w = jax.random.uniform(k3, (1, n_hidden_neurons), jnp.float32, -bound2, bound2)
    fc2_b = jax.random.uniform(k4, (1,), jnp.float32, -bound2, bound2)
    return fc1_w, fc1_b, fc2_w, fc2_b


if __name__ == "__main__":
    key = jax.random.PRNGKey(0)
    kx, kp = jax.random.split(key)

    N = 8          # batch of scalar samples
    HIDDEN = 32    # n_hidden_neurons

    x = jax.random.normal(kx, (N, 1), dtype=jnp.float32)
    fc1_w, fc1_b, fc2_w, fc2_b = init_params(kp, HIDDEN)

    out = regression_net_forward(x, fc1_w, fc1_b, fc2_w, fc2_b)
    out = jax.block_until_ready(out)

    # Reference in plain JAX (same math as the PyTorch forward).
    ref = jax.nn.sigmoid(x @ fc1_w.T + fc1_b) @ fc2_w.T + fc2_b
    assert out.shape == (N, 1)
    # Tolerance accounts for the EUP's approximate reciprocal (pl.reciprocal(approx=True)).
    assert jnp.allclose(out, ref, atol=2e-2, rtol=2e-2), float(jnp.max(jnp.abs(out - ref)))

    print("KERNEL_OK")
</pallas_src>

<mosaic_0001>
module attributes {stable_mosaic.version = 11 : i64} {
  func.func @regression_net_kernel(%arg0: i32, %arg1: memref<1x128xf32, #tpu.memory_space<vmem>>, %arg2: memref<32x1xf32, #tpu.memory_space<vmem>>, %arg3: memref<32x1xf32, #tpu.memory_space<vmem>>, %arg4: memref<32x1xf32, #tpu.memory_space<vmem>>, %arg5: memref<1xf32, #tpu.memory_space<smem>>, %arg6: memref<1x128xf32, #tpu.memory_space<vmem>>) attributes {dimension_semantics = [#tpu.dimension_semantics<parallel>], iteration_bounds = array<i64: 1>, scalar_prefetch = 0 : i64, scratch_operands = 0 : i64, tpu.core_type = #tpu.core_type<tc>, window_params = [{transform_indices = @transform_0, window_bounds = array<i64: 1, 128>}, {pipeline_mode = #tpu.pipeline_mode<synchronous>, transform_indices = @transform_1, window_bounds = array<i64: 32, 1>}, {pipeline_mode = #tpu.pipeline_mode<synchronous>, transform_indices = @transform_2, window_bounds = array<i64: 32, 1>}, {pipeline_mode = #tpu.pipeline_mode<synchronous>, transform_indices = @transform_3, window_bounds = array<i64: 32, 1>}, {transform_indices = @transform_4, window_bounds = array<i64: 1>}, {transform_indices = @transform_5, window_bounds = array<i64: 1, 128>}]} {
    %c0 = arith.constant 0 : index
    %c0_0 = arith.constant 0 : index
    %0 = vector.load %arg1[%c0, %c0_0] : memref<1x128xf32, #tpu.memory_space<vmem>>, vector<1x128xf32>
    %c0_1 = arith.constant 0 : index
    %c0_2 = arith.constant 0 : index
    %1 = vector.load %arg2[%c0_1, %c0_2] : memref<32x1xf32, #tpu.memory_space<vmem>>, vector<32x1xf32>
    %c0_3 = arith.constant 0 : index
    %c0_4 = arith.constant 0 : index
    %2 = vector.load %arg3[%c0_3, %c0_4] : memref<32x1xf32, #tpu.memory_space<vmem>>, vector<32x1xf32>
    %c0_5 = arith.constant 0 : index
    %c0_6 = arith.constant 0 : index
    %3 = vector.load %arg4[%c0_5, %c0_6] : memref<32x1xf32, #tpu.memory_space<vmem>>, vector<32x1xf32>
    %c0_7 = arith.constant 0 : index
    %4 = memref.load %arg5[%c0_7] : memref<1xf32, #tpu.memory_space<smem>>
    %5 = vector.broadcast %1 : vector<32x1xf32> to vector<32x128xf32>
    %6 = vector.broadcast %0 : vector<1x128xf32> to vector<32x128xf32>
    %7 = arith.mulf %5, %6 : vector<32x128xf32>
    %8 = vector.broadcast %2 : vector<32x1xf32> to vector<32x128xf32>
    %9 = arith.addf %7, %8 : vector<32x128xf32>
    %10 = math.absf %9 : vector<32x128xf32>
    %cst = arith.constant 0.000000e+00 : f32
    %11 = vector.broadcast %cst : f32 to vector<32x128xf32>
    %12 = arith.subf %11, %10 : vector<32x128xf32>
    %13 = math.exp %12 : vector<32x128xf32>
    %cst_8 = arith.constant 1.000000e+00 : f32
    %14 = vector.broadcast %cst_8 : f32 to vector<32x128xf32>
    %15 = arith.addf %14, %13 : vector<32x128xf32>
    %16 = tpu.reciprocal %15 {approx = true} : vector<32x128xf32> -> vector<32x128xf32>
    %cst_9 = arith.constant 0.000000e+00 : f32
    %17 = vector.broadcast %cst_9 : f32 to vector<32x128xf32>
    %18 = arith.cmpf oge, %9, %17 : vector<32x128xf32>
    %19 = arith.mulf %13, %16 : vector<32x128xf32>
    %20 = arith.select %18, %16, %19 : vector<32x128xi1>, vector<32x128xf32>
    %21 = vector.broadcast %3 : vector<32x1xf32> to vector<32x128xf32>
    %22 = arith.mulf %20, %21 : vector<32x128xf32>
    %cst_10 = arith.constant dense<0.000000e+00> : vector<128xf32>
    %23 = vector.multi_reduction <add>, %22, %cst_10 [0] : vector<32x128xf32> to vector<128xf32>
    %24 = vector.shape_cast %23 : vector<128xf32> to vector<1x128xf32>
    %25 = vector.broadcast %4 : f32 to vector<1x128xf32>
    %26 = arith.addf %24, %25 : vector<1x128xf32>
    %c0_11 = arith.constant 0 : index
    %c0_12 = arith.constant 0 : index
    %27 = vector.load %arg6[%c0_11, %c0_12] : memref<1x128xf32, #tpu.memory_space<vmem>>, vector<1x128xf32>
    tpu.vector_store %arg6[%c0_11, %c0_12], %26 {strides = array<i32>} : memref<1x128xf32, #tpu.memory_space<vmem>>, vector<1x128xf32>,
    return
  }
  func.func @transform_0(%arg0: i32) -> (i32, i32) {
    %c0_i32 = arith.constant 0 : i32
    %c0_i32_0 = arith.constant 0 : i32
    return %c0_i32, %arg0 : i32, i32
  }
  func.func @transform_1(%arg0: i32) -> (i32, i32) {
    %c0_i32 = arith.constant 0 : i32
    %c0_i32_0 = arith.constant 0 : i32
    %c0_i32_1 = arith.constant 0 : i32
    return %c0_i32, %c0_i32_0 : i32, i32
  }
  func.func @transform_2(%arg0: i32) -> (i32, i32) {
    %c0_i32 = arith.constant 0 : i32
    %c0_i32_0 = arith.constant 0 : i32
    %c0_i32_1 = arith.constant 0 : i32
    return %c0_i32, %c0_i32_0 : i32, i32
  }
  func.func @transform_3(%arg0: i32) -> (i32, i32) {
    %c0_i32 = arith.constant 0 : i32
    %c0_i32_0 = arith.constant 0 : i32
    %c0_i32_1 = arith.constant 0 : i32
    return %c0_i32, %c0_i32_0 : i32, i32
  }
  func.func @transform_4(%arg0: i32) -> i32 {
    %c0_i32 = arith.constant 0 : i32
    %c0_i32_0 = arith.constant 0 : i32
    return %c0_i32 : i32
  }
  func.func @transform_5(%arg0: i32) -> (i32, i32) {
    %c0_i32 = arith.constant 0 : i32
    %c0_i32_0 = arith.constant 0 : i32
    return %c0_i32, %arg0 : i32, i32
  }
}

</mosaic_0001>

<bundles_post_ra>
// kernel: regression_net_forward.1
= control target key start
LH: loop header
LB: loop body
LE: loop exit
PB: predicated region body
PF: predicated region fallthrough
CT: control target
= control target key end

     0   :  { %v185_v0 = vmov 0   ;;  %s261_s1 = inlined_call_operand.vmem [shape: f32[32,1], index: 1, kind: input, shape index: {}]   ;;  %s262_s2 = inlined_call_operand.vmem [shape: f32[32,1], index: 2, kind: input, shape index: {}]   ;;  %s263_s3 = inlined_call_operand.vmem [shape: f32[32,1], index: 3, kind: input, shape index: {}]   ;;  %s264_s0 = inlined_call_operand.vmem [shape: f32[1,128], index: 0, kind: input, shape index: {}]   ;;  %s265_s4 = inlined_call_operand.<no memory space> [shape: f32[1], index: 4, kind: input, shape index: {}]   ;;  %s266_s5 = inlined_call_operand.vmem [shape: f32[1,128], index: 5, kind: output, shape index: {}]  }
   0x1   :  { %168 = vset.pattern.permute.xlu1 %v185_v0  ;;  %167 = vset.pattern.permute.xlu0 %v185_v0  ;;  %v24_v1 = vld [vmem:[%s261_s1 + $0x10] sm:$0xff]  ;;  %v22_v2 = vld [vmem:[%s261_s1] sm:$0xff]  ;;  %v23_v4 = vld [vmem:[%s261_s1 + $0x8] sm:$0xff] }
   0x2   :  { %47 = vperm.xlu1 %168, %v24_v1   ;;  %37 = vperm.xlu0 %167, %v22_v2   ;;  %v26_v3 = vld [vmem:[%s262_s2] sm:$0xff]  ;;  %v25_v5 = vld [vmem:[%s261_s1 + $0x18] sm:$0xff]  ;;  %v27_v6 = vld [vmem:[%s262_s2 + $0x8] sm:$0xff] }
   0x3   :  { %v29_v7 = vld [vmem:[%s262_s2 + $0x18] sm:$0xff]  ;;  %v28_v8 = vld [vmem:[%s262_s2 + $0x10] sm:$0xff]  ;;  %v31_v9 = vld [vmem:[%s263_s3 + $0x8] sm:$0xff] }
   0x4   :  { %v30_v10 = vld [vmem:[%s263_s3] sm:$0xff]  ;;  %v33_v11 = vld [vmem:[%s263_s3 + $0x18] sm:$0xff]  ;;  %v32_v12 = vld [vmem:[%s263_s3 + $0x10] sm:$0xff] }
   0x5   :  { %v165_v14 = vld [vmem:[%s264_s0] ss:$0 sm:$0xff] }
   0x6   :  { %67 = vperm.xlu1 %168, %v26_v3   ;;  %42 = vperm.xlu0 %167, %v23_v4  }
   0xa   :  { %52 = vperm.xlu1 %168, %v25_v5   ;;  %72 = vperm.xlu0 %167, %v27_v6  }
   0xe   :  { %82 = vperm.xlu1 %168, %v29_v7   ;;  %77 = vperm.xlu0 %167, %v28_v8  }
  0x12   :  { %132 = vperm.xlu1 %168, %v31_v9   ;;  %127 = vperm.xlu0 %167, %v30_v10  }
  0x16   :  { %142 = vperm.xlu1 %168, %v33_v11   ;;  %137 = vperm.xlu0 %167, %v32_v12  }
  0x81   :  { %v48_v13 = vpop.permute.xlu1 %47  ;;  %v38_v15 = vpop.permute.xlu0 %37 }
  0x82   :  { %v61_v16 = vmul.f32 %v165_v14, %v38_v15  ;;  %v63_v26 = vmul.f32 %v165_v14, %v48_v13 }
  0x85   :  { %v68_v17 = vpop.permute.xlu1 %67  ;;  %v43_v18 = vpop.permute.xlu0 %42 }
  0x86   :  { %v85_v19 = vadd.f32 %v68_v17, %v61_v16  ;;  %v62_v21 = vmul.f32 %v165_v14, %v43_v18 }
  0x88   :  { %v89_v20 = vand.u32 2147483647, %v85_v19  ;;  %vm113_vm1 = vcmp.ge.f32.partialorder %v85_v19, 0.0 }
  0x89   :  { %v53_v22 = vpop.permute.xlu1 %52  ;;  %v73_v23 = vpop.permute.xlu0 %72 }
  0x8a   :  { %v93_v24 = vsub.f32 0.0, %v89_v20  ;;  %v86_v25 = vadd.f32 %v73_v23, %v62_v21  ;;  %v64_v28 = vmul.f32 %v165_v14, %v53_v22  ;;  %v158_v14 = vstv %s265_s4 }
  0x8c   :  { %v97_v27 = vmul.f32 1.442695, %v93_v24  ;;  %v90_v29 = vand.u32 2147483647, %v86_v25  ;;  %vm114_vm0 = vcmp.ge.f32.partialorder %v86_v25, 0.0 }
  0x8d   :  { %v83_v30 = vpop.permute.xlu1 %82  ;;  %v78_v31 = vpop.permute.xlu0 %77 }
  0x8e   :  { %169 = vpow2.f32 %v97_v27  ;;  %v94_v32 = vsub.f32 0.0, %v90_v29  ;;  %v88_v33 = vadd.f32 %v83_v30, %v64_v28  ;;  %v87_v34 = vadd.f32 %v78_v31, %v63_v26 }
  0x90   :  { %v99_v35 = vmul.f32 1.442695, %v94_v32  ;;  %v92_v36 = vand.u32 2147483647, %v88_v33  ;;  %v91_v37 = vand.u32 2147483647, %v87_v34 }
  0x91   :  { %v128_v54 = vpop.permute.xlu0 %127  ;;  %v133_v57 = vpop.permute.xlu1 %132  ;;  %vm116_vm2 = vcmp.ge.f32.partialorder %v88_v33, 0.0  ;;  %vm115_vm3 = vcmp.ge.f32.partialorder %v87_v34, 0.0 }
  0x92   :  { %171 = vpow2.f32 %v99_v35  ;;  %v96_v38 = vsub.f32 0.0, %v92_v36  ;;  %v95_v39 = vsub.f32 0.0, %v91_v37 }
  0x94   :  { %v103_v40 = vmul.f32 1.442695, %v96_v38  ;;  %v101_v41 = vmul.f32 1.442695, %v95_v39 }
  0x95   :  { %v138_v1 = vpop.permute.xlu0 %137  ;;  %v143_v5 = vpop.permute.xlu1 %142 }
  0x96   :  { %173 = vpow2.f32 %v103_v40 }
  0x97   :  { %175 = vpow2.f32 %v101_v41 }
  0x98   :  { %v170_v42 = vpop.eup %169 }
  0x99   :  { %v105_v43 = vadd.f32 1.0, %v170_v42 }
  0x9b   :  { %177 = vrcp.f32 %v105_v43 }
  0x9c   :  { %v172_v44 = vpop.eup %171 }
  0x9d   :  { %v106_v45 = vadd.f32 1.0, %v172_v44 }
  0x9f   :  { %179 = vrcp.f32 %v106_v45 }
  0xa0   :  { %v174_v46 = vpop.eup %173 }
  0xa1   :  { %v176_v47 = vpop.eup %175  ;;  %v108_v48 = vadd.f32 1.0, %v174_v46 }
  0xa2   :  { %v107_v49 = vadd.f32 1.0, %v176_v47 }
  0xa3   :  { %181 = vrcp.f32 %v108_v48 }
  0xa4   :  { %183 = vrcp.f32 %v107_v49 }
  0xa5   :  { %v178_v50 = vpop.eup %177 }
  0xa6   :  { %v117_v52 = vmul.f32 %v178_v50, %v170_v42 }
  0xa8   :  { %v121_v58 = vsel %vm113_vm1, %v178_v50, %v117_v52 }
  0xa9   :  { %v180_v51 = vpop.eup %179  ;;  %v145_v63 = vmul.f32 %v128_v54, %v121_v58 }
  0xaa   :  { %v118_v53 = vmul.f32 %v180_v51, %v172_v44 }
  0xac   :  { %v122_v55 = vsel %vm114_vm0, %v180_v51, %v118_v53 }
  0xad   :  { %v182_v56 = vpop.eup %181  ;;  %v146_v60 = vmul.f32 %v133_v57, %v122_v55 }
  0xae   :  { %v184_v59 = vpop.eup %183  ;;  %v120_v61 = vmul.f32 %v182_v56, %v174_v46 }
  0xaf   :  { %v119_v62 = vmul.f32 %v184_v59, %v176_v47  ;;  %v149_v3 = vadd.f32 %v146_v60, %v145_v63 }
  0xb0   :  { %v124_v0 = vsel %vm116_vm2, %v182_v56, %v120_v61 }
  0xb1   :  { %v123_v2 = vsel %vm115_vm3, %v184_v59, %v119_v62  ;;  %v148_v6 = vmul.f32 %v143_v5, %v124_v0 }
  0xb2   :  { %v147_v4 = vmul.f32 %v138_v1, %v123_v2 }
  0xb4   :  { %v150_v7 = vadd.f32 %v149_v3, %v147_v4 }
  0xb6   :  { %v151_v8 = vadd.f32 %v150_v7, %v148_v6 }
  0xb8   :  { %v152_v9 = vrot.slane %v151_v8, 4 }
  0xba   :  { %v153_v10 = vadd.f32 %v152_v9, %v151_v8 }
  0xbc   :  { %v154_v11 = vrot.slane %v153_v10, 2 }
  0xbe   :  { %v155_v12 = vadd.f32 %v154_v11, %v153_v10 }
  0xc0   :  { %v156_v13 = vrot.slane %v155_v12, 1 }
  0xc2   :  { %v157_v15 = vadd.f32 %v156_v13, %v155_v12 }
  0xc4   :  { %v159_v16 = vadd.f32 %v158_v14, %v157_v15 }
  0xc6   :  { %160 = vst [vmem:[%s266_s5] sm:$0x1] %v159_v16 }

</bundles_post_ra>
